<compile_context>
chip_gen: v7x
topology: tpu7x:2x2x1
jax: 0.10.0
libtpu: 0.0.40
codegen_flags: <defaults>
</compile_context>

<pallas_src>
import functools

import jax
import jax.numpy as jnp
from jax import lax
from jax.experimental import pallas as pl
from jax.experimental.pallas import tpu as pltpu


_LANE = 128
_SUBLANE = 8
_VMEM_LIMIT_BYTES = 48 * 1024 * 1024          # < 64 MiB physical on v7x
_FUSE_VMEM_BUDGET = 36 * 1024 * 1024          # headroom under the 48 MiB limit


def _round_up(x, m):
    return (x + m - 1) // m * m


def _pick_tile(dim_p, max_tile):
    """Largest multiple of 128 that divides dim_p and is <= max_tile."""
    best = _LANE
    t = _LANE
    while t <= min(max_tile, dim_p):
        if dim_p % t == 0:
            best = t
        t += _LANE
    return best


def _apply_activation(h, activation):
    if activation == "relu":
        return jnp.maximum(h, 0.0)
    if activation == "tanh":
        return jnp.tanh(h)
    if activation == "gelu":
        # exact erf form, matching torch.nn.GELU default
        return jax.nn.gelu(h, approximate=False)
    raise ValueError(f"unknown activation {activation}")


def _act_layernorm(z, bias, gamma, beta, *, activation, eps, valid_h):
    """f32 epilogue: bias + activation + LayerNorm(gamma, beta).

    LayerNorm statistics are computed over the first `valid_h` feature columns
    only; columns >= valid_h are zero padding (zero weight cols / bias / gamma).
    """
    h = _apply_activation(z + bias, activation)
    hp = h.shape[-1]
    inv_n = 1.0 / float(valid_h)
    if valid_h == hp:
        mean = jnp.sum(h, axis=-1, keepdims=True) * inv_n
        c = h - mean
    else:
        col = lax.broadcasted_iota(jnp.int32, h.shape, h.ndim - 1)
        mask = col < valid_h
        h = jnp.where(mask, h, 0.0)
        mean = jnp.sum(h, axis=-1, keepdims=True) * inv_n
        c = jnp.where(mask, h - mean, 0.0)
    var = jnp.sum(c * c, axis=-1, keepdims=True) * inv_n
    return (c * lax.rsqrt(var + eps)) * gamma + beta


# ----------------------------------------------------------------------------
# Single block: LayerNorm(act(x @ W + b)) with K-tiled matmul + f32 accumulator
# ----------------------------------------------------------------------------
def _linear_act_ln_kernel(x_ref, w_ref, b_ref, g_ref, beta_ref, o_ref, acc_ref,
                          *, activation, eps, valid_h):
    k = pl.program_id(1)

    @pl.when(k == 0)
    def _init():
        acc_ref[...] = jnp.zeros_like(acc_ref)

    acc_ref[...] += jnp.dot(x_ref[...], w_ref[...],
                            preferred_element_type=jnp.float32)

    @pl.when(k == pl.num_programs(1) - 1)
    def _finish():
        y = _act_layernorm(acc_ref[...], b_ref[...], g_ref[...], beta_ref[...],
                           activation=activation, eps=eps, valid_h=valid_h)
        o_ref[...] = y.astype(o_ref.dtype)


def _linear_act_ln(x_p, w_p, b_p, g_p, beta_p, *, activation, eps, valid_h,
                   tm, tk):
    """x_p: (Bp, Dp) matmul dtype; w_p: (Dp, Hp) matmul dtype; params f32 (1, Hp)."""
    Bp, Dp = x_p.shape
    Hp = w_p.shape[1]
    grid = (Bp // tm, Dp // tk)

    flops = 2 * Bp * Dp * Hp
    transc = Bp * Hp * (0 if activation == "relu" else 1) + Bp
    bytes_acc = (x_p.size * x_p.dtype.itemsize + w_p.size * w_p.dtype.itemsize
                 + 3 * Hp * 4 + Bp * Hp * 4)

    kernel = functools.partial(_linear_act_ln_kernel, activation=activation,
                               eps=eps, valid_h=valid_h)
    return pl.pallas_call(
        kernel,
        out_shape=jax.ShapeDtypeStruct((Bp, Hp), jnp.float32),
        grid_spec=pltpu.PrefetchScalarGridSpec(
            num_scalar_prefetch=0,
            grid=grid,
            in_specs=[
                pl.BlockSpec((tm, tk), lambda i, k: (i, k)),     # x row/K tile
                pl.BlockSpec((tk, Hp), lambda i, k: (k, 0)),     # weight K tile
                pl.BlockSpec((1, Hp), lambda i, k: (0, 0)),      # bias
                pl.BlockSpec((1, Hp), lambda i, k: (0, 0)),      # ln gamma
                pl.BlockSpec((1, Hp), lambda i, k: (0, 0)),      # ln beta
            ],
            out_specs=pl.BlockSpec((tm, Hp), lambda i, k: (i, 0)),
            scratch_shapes=[pltpu.VMEM((tm, Hp), jnp.float32)],
        ),
        compiler_params=pltpu.CompilerParams(
            dimension_semantics=("parallel", "arbitrary"),
            vmem_limit_bytes=_VMEM_LIMIT_BYTES),
        cost_estimate=pl.CostEstimate(flops=int(flops),
                                      transcendentals=int(transc),
                                      bytes_accessed=int(bytes_acc)),
    )(x_p, w_p, b_p, g_p, beta_p)


# ----------------------------------------------------------------------------
# Fused stack of the layer_N identical hidden blocks: one pallas_call, grid over
# layers, activation tile kept resident in VMEM scratch between layers.
# ----------------------------------------------------------------------------
def _hidden_stack_kernel(x_ref, w_ref, b_ref, g_ref, beta_ref, o_ref, h_ref,
                         *, activation, eps, valid_h):
    layer = pl.program_id(1)

    @pl.when(layer == 0)
    def _load():
        h_ref[...] = x_ref[...].astype(jnp.float32)

    z = jnp.dot(h_ref[...].astype(w_ref.dtype), w_ref[...],
                preferred_element_type=jnp.float32)
    h_ref[...] = _act_layernorm(z, b_ref[...], g_ref[...], beta_ref[...],
                                activation=activation, eps=eps, valid_h=valid_h)

    @pl.when(layer == pl.num_programs(1) - 1)
    def _store():
        o_ref[...] = h_ref[...].astype(o_ref.dtype)


def _hidden_stack(x_p, ws_p, bs_p, gs_p, betas_p, *, activation, eps, valid_h, tm):
    """x_p: (Bp, Hp) matmul dtype; ws_p: (L, Hp, Hp); bs/gs/betas: (L, 1, Hp) f32."""
    Bp, Hp = x_p.shape
    L = ws_p.shape[0]
    grid = (Bp // tm, L)

    flops = 2 * Bp * Hp * Hp * L
    transc = L * (Bp * Hp * (0 if activation == "relu" else 1) + Bp)
    bytes_acc = (x_p.size * x_p.dtype.itemsize + ws_p.size * ws_p.dtype.itemsize
                 + 3 * L * Hp * 4 + Bp * Hp * 4)

    kernel = functools.partial(_hidden_stack_kernel, activation=activation,
                               eps=eps, valid_h=valid_h)
    return pl.pallas_call(
        kernel,
        out_shape=jax.ShapeDtypeStruct((Bp, Hp), jnp.float32),
        grid_spec=pltpu.PrefetchScalarGridSpec(
            num_scalar_prefetch=0,
            grid=grid,
            in_specs=[
                pl.BlockSpec((tm, Hp), lambda i, l: (i, 0)),          # activations in
                pl.BlockSpec((None, Hp, Hp), lambda i, l: (l, 0, 0)),  # per-layer W
                pl.BlockSpec((None, 1, Hp), lambda i, l: (l, 0, 0)),   # per-layer b
                pl.BlockSpec((None, 1, Hp), lambda i, l: (l, 0, 0)),   # per-layer gamma
                pl.BlockSpec((None, 1, Hp), lambda i, l: (l, 0, 0)),   # per-layer beta
            ],
            out_specs=pl.BlockSpec((tm, Hp), lambda i, l: (i, 0)),
            scratch_shapes=[pltpu.VMEM((tm, Hp), jnp.float32)],       # resident h
        ),
        compiler_params=pltpu.CompilerParams(
            dimension_semantics=("parallel", "arbitrary"),
            vmem_limit_bytes=_VMEM_LIMIT_BYTES),
        cost_estimate=pl.CostEstimate(flops=int(flops),
                                      transcendentals=int(transc),
                                      bytes_accessed=int(bytes_acc)),
    )(x_p, ws_p, bs_p, gs_p, betas_p)


# ----------------------------------------------------------------------------
# Parameter init (mirrors MLPLayer.__init__) and forward
# ----------------------------------------------------------------------------
def make_mlp_params(key, input_dim, hidden_size, layer_N, activation,
                    use_orthogonal=True):
    gain_name = "relu" if activation == "gelu" else activation
    gain = {"relu": 2.0 ** 0.5, "tanh": 5.0 / 3.0}[gain_name]

    if use_orthogonal:
        w_init = jax.nn.initializers.orthogonal(scale=gain)
    else:
        def w_init(k, shape, dtype=jnp.float32):
            fan_in, fan_out = shape
            limit = gain * (6.0 / (fan_in + fan_out)) ** 0.5
            return jax.random.uniform(k, shape, dtype, -limit, limit)

    params = []
    dims = [(input_dim, hidden_size)] + [(hidden_size, hidden_size)] * layer_N
    keys = jax.random.split(key, len(dims))
    for k, (din, dout) in zip(keys, dims):
        params.append(dict(
            w=w_init(k, (din, dout)).astype(jnp.float32),   # stored (in, out)
            b=jnp.zeros((dout,), jnp.float32),
            gamma=jnp.ones((dout,), jnp.float32),
            beta=jnp.zeros((dout,), jnp.float32),
        ))
    return params


def mlp_layer_forward(x, params, *, activation="relu", eps=1e-5,
                      tm=256, tk=512, matmul_dtype=jnp.bfloat16):
    """Equivalent of MLPLayer.forward: fc1 then layer_N clones of fc_h."""
    B, Din = x.shape
    Din_w, H = params[0]["w"].shape
    assert Din == Din_w
    n_hidden = len(params) - 1

    # Lane-dense padding of feature dims, batch padded to the row tile.
    Din_p = _round_up(Din, _LANE)
    tk_in = _pick_tile(Din_p, tk)
    Hp = _round_up(H, _LANE)
    tk_h = _pick_tile(Hp, tk)
    tm_eff = min(tm, _round_up(B, _SUBLANE))
    Bp = _round_up(B, tm_eff)

    f32 = jnp.float32
    item = jnp.dtype(matmul_dtype).itemsize

    def pad_params(p, din_p):
        w = jnp.pad(p["w"].astype(f32),
                    ((0, din_p - p["w"].shape[0]), (0, Hp - H)))
        b = jnp.pad(p["b"].astype(f32), (0, Hp - H)).reshape(1, Hp)
        g = jnp.pad(p["gamma"].astype(f32), (0, Hp - H)).reshape(1, Hp)
        bt = jnp.pad(p["beta"].astype(f32), (0, Hp - H)).reshape(1, Hp)
        return w.astype(matmul_dtype), b, g, bt

    # fc1
    x_p = jnp.pad(x.astype(f32), ((0, Bp - B), (0, Din_p - Din)))
    w0, b0, g0, bt0 = pad_params(params[0], Din_p)
    h = _linear_act_ln(x_p.astype(matmul_dtype), w0, b0, g0, bt0,
                       activation=activation, eps=eps, valid_h=H,
                       tm=tm_eff, tk=tk_in)

    if n_hidden > 0:
        padded = [pad_params(p, Hp) for p in params[1:]]
        # VMEM estimate for the fused path: double-buffered weight + act in/out
        # tiles + resident f32 activation scratch + per-layer params.
        est = (2 * Hp * Hp * item            # weight, double-buffered
               + 2 * tm_eff * Hp * item      # activation in, double-buffered
               + 2 * tm_eff * Hp * 4         # output, double-buffered
               + tm_eff * Hp * 4             # resident scratch
               + 6 * Hp * 4)                 # bias/gamma/beta
        if est <= _FUSE_VMEM_BUDGET:
            ws = jnp.stack([p[0] for p in padded])     # (L, Hp, Hp)
            bs = jnp.stack([p[1] for p in padded])     # (L, 1, Hp)
            gs = jnp.stack([p[2] for p in padded])
            bts = jnp.stack([p[3] for p in padded])
            h = _hidden_stack(h.astype(matmul_dtype), ws, bs, gs, bts,
                              activation=activation, eps=eps, valid_h=H,
                              tm=tm_eff)
        else:
            # Weights too large to keep a whole (Hp, Hp) block in VMEM: fall back
            # to per-layer K-tiled calls.
            for (w, b, g, bt) in padded:
                h = _linear_act_ln(h.astype(matmul_dtype), w, b, g, bt,
                                   activation=activation, eps=eps, valid_h=H,
                                   tm=tm_eff, tk=tk_h)

    return h[:B, :H]


# ----------------------------------------------------------------------------
# Pure-JAX reference (same bf16 matmul operands, f32 epilogue)
# ----------------------------------------------------------------------------
def _reference(x, params, activation, eps=1e-5, matmul_dtype=jnp.bfloat16):
    if activation == "relu":
        act = jax.nn.relu
    elif activation == "tanh":
        act = jnp.tanh
    else:
        act = functools.partial(jax.nn.gelu, approximate=False)
    h = x.astype(jnp.float32)
    for p in params:
        z = jnp.dot(h.astype(matmul_dtype), p["w"].astype(matmul_dtype),
                    preferred_element_type=jnp.float32)
        a = act(z + p["b"])
        mean = jnp.mean(a, axis=-1, keepdims=True)
        c = a - mean
        var = jnp.mean(c * c, axis=-1, keepdims=True)
        h = c * lax.rsqrt(var + eps) * p["gamma"] + p["beta"]
    return h


if __name__ == "__main__":
    key = jax.random.PRNGKey(0)
    k_x, k_p = jax.random.split(key)

    # Small, module-consistent shapes; deliberately not multiples of 128 to
    # exercise the lane-dense padding + masked LayerNorm path.
    batch, input_dim, hidden_size, layer_N = 16, 48, 96, 2
    activation = "relu"

    x = jax.random.normal(k_x, (batch, input_dim), jnp.float32)
    params = make_mlp_params(k_p, input_dim, hidden_size, layer_N, activation)

    out = mlp_layer_forward(x, params, activation=activation)
    out = jax.block_until_ready(out)

    ref = _reference(x, params, activation)
    assert out.shape == (batch, hidden_size)
    assert bool(jnp.allclose(out, ref, atol=2e-2, rtol=2e-2)), \
        f"mismatch vs reference (max abs err {float(jnp.max(jnp.abs(out - ref)))})"

    print("KERNEL_OK")
</pallas_src>

<mosaic_0001>
module attributes {stable_mosaic.version = 11 : i64} {
  func.func @_linear_act_ln_kernel(%arg0: i32, %arg1: i32, %arg2: memref<16x128xbf16, #tpu.memory_space<vmem>>, %arg3: memref<128x128xbf16, #tpu.memory_space<vmem>>, %arg4: memref<1x128xf32, #tpu.memory_space<vmem>>, %arg5: memref<1x128xf32, #tpu.memory_space<vmem>>, %arg6: memref<1x128xf32, #tpu.memory_space<vmem>>, %arg7: memref<16x128xf32, #tpu.memory_space<vmem>>, %arg8: memref<16x128xf32, #tpu.memory_space<vmem>>) attributes {dimension_semantics = [#tpu.dimension_semantics<parallel>, #tpu.dimension_semantics<arbitrary>], iteration_bounds = array<i64: 1, 1>, scalar_prefetch = 0 : i64, scratch_operands = 1 : i64, tpu.core_type = #tpu.core_type<tc>, window_params = [{transform_indices = @transform_0, window_bounds = array<i64: 16, 128>}, {transform_indices = @transform_1, window_bounds = array<i64: 128, 128>}, {pipeline_mode = #tpu.pipeline_mode<synchronous>, transform_indices = @transform_2, window_bounds = array<i64: 1, 128>}, {pipeline_mode = #tpu.pipeline_mode<synchronous>, transform_indices = @transform_3, window_bounds = array<i64: 1, 128>}, {pipeline_mode = #tpu.pipeline_mode<synchronous>, transform_indices = @transform_4, window_bounds = array<i64: 1, 128>}, {transform_indices = @transform_5, window_bounds = array<i64: 16, 128>}]} {
    %c0_i32 = arith.constant 0 : i32
    %0 = arith.cmpi eq, %arg1, %c0_i32 : i32
    %1 = arith.extui %0 : i1 to i32
    %c0_i32_0 = arith.constant 0 : i32
    %2 = arith.cmpi ne, %1, %c0_i32_0 : i32
    scf.if %2 {
      %cst_10 = arith.constant 0.000000e+00 : f32
      %12 = vector.broadcast %cst_10 : f32 to vector<16x128xf32>
      %c0_11 = arith.constant 0 : index
      %c0_12 = arith.constant 0 : index
      %13 = vector.load %arg8[%c0_11, %c0_12] : memref<16x128xf32, #tpu.memory_space<vmem>>, vector<16x128xf32>
      tpu.vector_store %arg8[%c0_11, %c0_12], %12 {strides = array<i32>} : memref<16x128xf32, #tpu.memory_space<vmem>>, vector<16x128xf32>,
    } else {
    }
    %c0 = arith.constant 0 : index
    %c0_1 = arith.constant 0 : index
    %3 = vector.load %arg8[%c0, %c0_1] : memref<16x128xf32, #tpu.memory_space<vmem>>, vector<16x128xf32>
    %c0_2 = arith.constant 0 : index
    %c0_3 = arith.constant 0 : index
    %4 = vector.load %arg2[%c0_2, %c0_3] : memref<16x128xbf16, #tpu.memory_space<vmem>>, vector<16x128xbf16>
    %c0_4 = arith.constant 0 : index
    %c0_5 = arith.constant 0 : index
    %5 = vector.load %arg3[%c0_4, %c0_5] : memref<128x128xbf16, #tpu.memory_space<vmem>>, vector<128x128xbf16>
    %cst = arith.constant dense<0.000000e+00> : vector<16x128xf32>
    %6 = tpu.matmul %4, %5, %cst {dimension_numbers = #tpu.dot_dimension_numbers<[1], [0], [0], [1], [0, 0, 1, 1], [], []>} : vector<16x128xbf16>, vector<128x128xbf16>, vector<16x128xf32> -> vector<16x128xf32>
    %7 = arith.addf %3, %6 : vector<16x128xf32>
    %c0_6 = arith.constant 0 : index
    %c0_7 = arith.constant 0 : index
    %8 = vector.load %arg8[%c0_6, %c0_7] : memref<16x128xf32, #tpu.memory_space<vmem>>, vector<16x128xf32>
    tpu.vector_store %arg8[%c0_6, %c0_7], %7 {strides = array<i32>} : memref<16x128xf32, #tpu.memory_space<vmem>>, vector<16x128xf32>,
    %c0_i32_8 = arith.constant 0 : i32
    %9 = arith.cmpi eq, %arg1, %c0_i32_8 : i32
    %10 = arith.extui %9 : i1 to i32
    %c0_i32_9 = arith.constant 0 : i32
    %11 = arith.cmpi ne, %10, %c0_i32_9 : i32
    scf.if %11 {
      %c0_10 = arith.constant 0 : index
      %c0_11 = arith.constant 0 : index
      %12 = vector.load %arg8[%c0_10, %c0_11] : memref<16x128xf32, #tpu.memory_space<vmem>>, vector<16x128xf32>
      %c0_12 = arith.constant 0 : index
      %c0_13 = arith.constant 0 : index
      %13 = vector.load %arg4[%c0_12, %c0_13] : memref<1x128xf32, #tpu.memory_space<vmem>>, vector<1x128xf32>
      %c0_14 = arith.constant 0 : index
      %c0_15 = arith.constant 0 : index
      %14 = vector.load %arg5[%c0_14, %c0_15] : memref<1x128xf32, #tpu.memory_space<vmem>>, vector<1x128xf32>
      %c0_16 = arith.constant 0 : index
      %c0_17 = arith.constant 0 : index
      %15 = vector.load %arg6[%c0_16, %c0_17] : memref<1x128xf32, #tpu.memory_space<vmem>>, vector<1x128xf32>
      %16 = vector.broadcast %13 : vector<1x128xf32> to vector<16x128xf32>
      %17 = arith.addf %12, %16 : vector<16x128xf32>
      %cst_18 = arith.constant 0.000000e+00 : f32
      %18 = vector.broadcast %cst_18 : f32 to vector<16x128xf32>
      %19 = arith.maximumf %17, %18 : vector<16x128xf32>
      %20 = tpu.iota {dimensions = array<i32: 1>} : vector<16x128xi32>
      %c96_i32 = arith.constant 96 : i32
      %21 = vector.broadcast %c96_i32 : i32 to vector<16x128xi32>
      %22 = arith.cmpi slt, %20, %21 : vector<16x128xi32>
      %cst_19 = arith.constant 0.000000e+00 : f32
      %23 = vector.broadcast %cst_19 : f32 to vector<16x128xf32>
      %24 = arith.select %22, %19, %23 : vector<16x128xi1>, vector<16x128xf32>
      %cst_20 = arith.constant dense<0.000000e+00> : vector<16xf32>
      %25 = vector.multi_reduction <add>, %24, %cst_20 [1] : vector<16x128xf32> to vector<16xf32>
      %26 = vector.shape_cast %25 : vector<16xf32> to vector<16x1xf32>
      %cst_21 = arith.constant 0.010416667 : f32
      %27 = vector.broadcast %cst_21 : f32 to vector<16x1xf32>
      %28 = arith.mulf %26, %27 : vector<16x1xf32>
      %29 = vector.broadcast %28 : vector<16x1xf32> to vector<16x128xf32>
      %30 = arith.subf %24, %29 : vector<16x128xf32>
      %cst_22 = arith.constant 0.000000e+00 : f32
      %31 = vector.broadcast %cst_22 : f32 to vector<16x128xf32>
      %32 = arith.select %22, %30, %31 : vector<16x128xi1>, vector<16x128xf32>
      %33 = arith.mulf %32, %32 : vector<16x128xf32>
      %cst_23 = arith.constant dense<0.000000e+00> : vector<16xf32>
      %34 = vector.multi_reduction <add>, %33, %cst_23 [1] : vector<16x128xf32> to vector<16xf32>
      %35 = vector.shape_cast %34 : vector<16xf32> to vector<16x1xf32>
      %cst_24 = arith.constant 0.010416667 : f32
      %36 = vector.broadcast %cst_24 : f32 to vector<16x1xf32>
      %37 = arith.mulf %35, %36 : vector<16x1xf32>
      %cst_25 = arith.constant 9.99999974E-6 : f32
      %38 = vector.broadcast %cst_25 : f32 to vector<16x1xf32>
      %39 = arith.addf %37, %38 : vector<16x1xf32>
      %40 = math.rsqrt %39 : vector<16x1xf32>
      %41 = vector.broadcast %40 : vector<16x1xf32> to vector<16x128xf32>
      %42 = arith.mulf %32, %41 : vector<16x128xf32>
      %43 = vector.broadcast %14 : vector<1x128xf32> to vector<16x128xf32>
      %44 = arith.mulf %42, %43 : vector<16x128xf32>
      %45 = vector.broadcast %15 : vector<1x128xf32> to vector<16x128xf32>
      %46 = arith.addf %44, %45 : vector<16x128xf32>
      %c0_26 = arith.constant 0 : index
      %c0_27 = arith.constant 0 : index
      %47 = vector.load %arg7[%c0_26, %c0_27] : memref<16x128xf32, #tpu.memory_space<vmem>>, vector<16x128xf32>
      tpu.vector_store %arg7[%c0_26, %c0_27], %46 {strides = array<i32>} : memref<16x128xf32, #tpu.memory_space<vmem>>, vector<16x128xf32>,
    } else {
    }
    return
  }
  func.func @transform_0(%arg0: i32, %arg1: i32) -> (i32, i32) {
    %c0_i32 = arith.constant 0 : i32
    return %arg0, %arg1 : i32, i32
  }
  func.func @transform_1(%arg0: i32, %arg1: i32) -> (i32, i32) {
    %c0_i32 = arith.constant 0 : i32
    %c0_i32_0 = arith.constant 0 : i32
    return %arg1, %c0_i32 : i32, i32
  }
  func.func @transform_2(%arg0: i32, %arg1: i32) -> (i32, i32) {
    %c0_i32 = arith.constant 0 : i32
    %c0_i32_0 = arith.constant 0 : i32
    %c0_i32_1 = arith.constant 0 : i32
    return %c0_i32, %c0_i32_0 : i32, i32
  }
  func.func @transform_3(%arg0: i32, %arg1: i32) -> (i32, i32) {
    %c0_i32 = arith.constant 0 : i32
    %c0_i32_0 = arith.constant 0 : i32
    %c0_i32_1 = arith.constant 0 : i32
    return %c0_i32, %c0_i32_0 : i32, i32
  }
  func.func @transform_4(%arg0: i32, %arg1: i32) -> (i32, i32) {
    %c0_i32 = arith.constant 0 : i32
    %c0_i32_0 = arith.constant 0 : i32
    %c0_i32_1 = arith.constant 0 : i32
    return %c0_i32, %c0_i32_0 : i32, i32
  }
  func.func @transform_5(%arg0: i32, %arg1: i32) -> (i32, i32) {
    %c0_i32 = arith.constant 0 : i32
    %c0_i32_0 = arith.constant 0 : i32
    return %arg0, %c0_i32 : i32, i32
  }
}

</mosaic_0001>

<bundles_post_ra>
// kernel: tpu_custom_call.1
= control target key start
LH: loop header
LB: loop body
LE: loop exit
PB: predicated region body
PF: predicated region fallthrough
CT: control target
= control target key end

     0   :  { %10 = vsyncpa [#allocation4], 0  ;;  %s481_s0 = inlined_call_operand.hbm [shape: bf16[16,128], index: 0, kind: input, shape index: {}]   ;;  %s482_s1 = inlined_call_operand.hbm [shape: bf16[128,128], index: 1, kind: input, shape index: {}]   ;;  %s483_s2 = inlined_call_operand.vmem [shape: f32[1,128], index: 2, kind: input, shape index: {}]   ;;  %s484_s3 = inlined_call_operand.vmem [shape: f32[1,128], index: 3, kind: input, shape index: {}]   ;;  %s485_s4 = inlined_call_operand.vmem [shape: f32[1,128], index: 4, kind: input, shape index: {}]   ;;  %s486_s5 = inlined_call_operand.hbm [shape: f32[16,128], index: 5, kind: output, shape index: {}]  }
   0x1   :  { %11 = vsyncpa [#allocation7], 0 }
   0x2   :  { %12 = vsyncpa [#allocation5], 0  ;;  %s393_s18 = smov [#allocation3]   ;;  %s321_s22 = scalar_lea.hbm %s481_s0, 128 }
   0x3   :  { %s18_s19 = sshll.u32 %s393_s18, 4  ;;  %p322_p0 = scmp.ne.s32.totalorder %s481_s0, %s321_s22  ;;  %s19_s19 = int_to_ptr.vmem [resolvable:$true] %s18_s19 }
   0x4   :  { %p325_p1 = scmp.lt.u32.totalorder %s321_s22, %s481_s0 }
   0x6   :  { %p327_p2 = pnand %p325_p1, %p322_p0 }
   0x8   :  { %330 = shalt.err (!%p327_p2)
}
   0x9   :  { %s331_s27 = scalar_lea.vmem %s19_s19, 128  ;;  %p336_p4 = scmp.lt.s32.totalorder %s19_s19, %s19_s19 }
   0xa   :  { %p332_p3 = scmp.ne.s32.totalorder %s19_s19, %s331_s27  ;;  %p337_p5 = scmp.lt.s32.totalorder %s331_s27, %s331_s27 }
   0xc   :  { %p338_p6 = por %p337_p5, %p336_p4 }
   0xe   :  { %p339_p7 = pnand %p338_p6, %p332_p3 }
  0x10   :  { %342 = shalt.err (!%p339_p7)
}
  0x11   :  { %s394_s28 = smov 64   ;;  %s395_s29 = smov 4  }
  0x12   :  { %24 = dma.hbm_to_vmem [thread:$0]  %s481_s0, 128, %s19_s19, [#allocation4], %s394_s28, %s394_s28, %s395_s29  }
  0x13   :  { %s396_s7 = smov [#allocation6]   ;;  %s343_s11 = scalar_lea.hbm %s482_s1, 1024 }
  0x14   :  { %s30_s8 = sshll.u32 %s396_s7, 4  ;;  %p344_p8 = scmp.ne.s32.totalorder %s482_s1, %s343_s11  ;;  %s31_s8 = int_to_ptr.vmem [resolvable:$true] %s30_s8 }
  0x15   :  { %p347_p9 = scmp.lt.u32.totalorder %s343_s11, %s482_s1 }
  0x17   :  { %p349_p10 = pnand %p347_p9, %p344_p8 }
  0x19   :  { %352 = shalt.err (!%p349_p10)
}
  0x1a   :  { %s353_s16 = scalar_lea.vmem %s31_s8, 1024  ;;  %p358_p12 = scmp.lt.s32.totalorder %s31_s8, %s31_s8 }
  0x1b   :  { %p354_p11 = scmp.ne.s32.totalorder %s31_s8, %s353_s16  ;;  %p359_p13 = scmp.lt.s32.totalorder %s353_s16, %s353_s16 }
  0x1d   :  { %p360_p0 = por %p359_p13, %p358_p12 }
  0x1f   :  { %p361_p1 = pnand %p360_p0, %p354_p11 }
  0x21   :  { %364 = shalt.err (!%p361_p1)
}
  0x22   :  { %36 = dma.hbm_to_vmem [thread:$0]  %s482_s1, 1024, %s31_s8, [#allocation7], %s394_s28, %s394_s28, %s395_s29  }
  0x23   :  { %387 = dma.done.wait [#allocation4], 128  }
  0x24   :  { %388 = vsyncadd [#allocation4], 4294967168 }
  0x25   :  { %389 = dma.done.wait [#allocation7], 1024  }
  0x26   :  { %390 = vsyncadd [#allocation7], 4294966272  ;;  %v397_v0 = vmov 0.0   ;;  %vm398_vm0 = vmmov 0   ;;  %v308_v1 = vld [vmem:[#allocation6] sm:$0xff]   ;;  %v309_v2 = vld [vmem:[#allocation6 + $0x8] sm:$0xff]   ;;  %v193_v10 = vlaneseq }
  0x27   :  { %279 = vmatprep.subr.bf16.mxu0 %v397_v0  ;;  %295 = vmatprep.mubr.msk.bf16.mxu0 %vm398_vm0, %v397_v0  ;;  %v310_v3 = vld [vmem:[#allocation6 + $0x10] sm:$0xff]   ;;  %v311_v4 = vld [vmem:[#allocation6 + $0x18] sm:$0xff]   ;;  %v312_v5 = vld [vmem:[#allocation6 + $0x20] sm:$0xff]   ;;  %s399_s22 = smov [#allocation8]  }
  0x28   :  { %280 = vmatpush3.bf16.msra.mxu0 %v308_v1  ;;  %v313_v6 = vld [vmem:[#allocation6 + $0x28] sm:$0xff]   ;;  %v314_v7 = vld [vmem:[#allocation6 + $0x30] sm:$0xff]   ;;  %v315_v8 = vld [vmem:[#allocation6 + $0x38] sm:$0xff]   ;;  %v194_v12 = vand.u32 127, %v193_v10  ;;  %s245_s23 = sshll.u32 %s399_s22, 4  ;;  %s246_s23 = int_to_ptr.vmem [resolvable:$true] %s245_s23 }
  0x29   :  { %281 = vmatprep.subr.bf16.mxu0 %v397_v0  ;;  %v316_v9 = vld [vmem:[#allocation3] sm:$0xff]   ;;  %s365_s24 = scalar_lea.vmem %s246_s23, 256  ;;  %p370_p3 = scmp.lt.s32.totalorder %s246_s23, %s246_s23 }
  0x2a   :  { %v267_v11 = vld [vmem:[%s483_s2] ss:$0 sm:$0xff]  ;;  %vm195_vm1 = vcmp.lt.s32.totalorder %v194_v12, 96  ;;  %p366_p2 = scmp.ne.s32.totalorder %s246_s23, %s365_s24  ;;  %p371_p4 = scmp.lt.s32.totalorder %s365_s24, %s365_s24 }
  0x2b   :  { %v268_v40 = vld [vmem:[%s484_s3] ss:$0 sm:$0xff] }
  0x2c   :  { %282 = vmatpush3.bf16.msra.mxu0 %v309_v2  ;;  %v269_v42 = vld [vmem:[%s485_s4] ss:$0 sm:$0xff]  ;;  %p372_p5 = por %p371_p4, %p370_p3 }
  0x2d   :  { %283 = vmatprep.subr.bf16.mxu0 %v397_v0 }
  0x2e   :  { %p373_p6 = pnand %p372_p5, %p366_p2 }
  0x30   :  { %284 = vmatpush3.bf16.msra.mxu0 %v310_v3 }
  0x31   :  { %285 = vmatprep.subr.bf16.mxu0 %v397_v0 }
  0x34   :  { %286 = vmatpush3.bf16.msra.mxu0 %v311_v4 }
  0x35   :  { %287 = vmatprep.subr.bf16.mxu0 %v397_v0 }
  0x38   :  { %288 = vmatpush3.bf16.msra.mxu0 %v312_v5 }
  0x39   :  { %289 = vmatprep.subr.bf16.mxu0 %v397_v0 }
  0x3c   :  { %290 = vmatpush3.bf16.msra.mxu0 %v313_v6 }
  0x3d   :  { %291 = vmatprep.subr.bf16.mxu0 %v397_v0 }
  0x40   :  { %292 = vmatpush3.bf16.msra.mxu0 %v314_v7 }
  0x41   :  { %293 = vmatprep.subr.bf16.mxu0 %v397_v0 }
  0x44   :  { %294 = vmatpush3.bf16.msra.mxu0 %v315_v8 }
  0x47   :  { %296 = vmatmul.mubr.bf16.vlgmr.msra.gmra.mrb[0].mxu0 %v316_v9 }
 0x11a   :  { %v164_v13 = vpop.f32.mrb[0].mxu0 }
 0x11b   :  { %v189_v14 = vadd.f32 %v267_v11, %v164_v13  ;;  %v297_v15 = vpop.f32.mrb[1].mxu0 }
 0x11c   :  { %v167_v16 = vpop.f32.mrb[2].mxu0 }
 0x11d   :  { %v191_v17 = vmax.f32 %v189_v14, 0.0  ;;  %v190_v18 = vadd.f32 %v267_v11, %v167_v16  ;;  %v298_v19 = vpop.f32.mrb[3].mxu0 }
 0x11f   :  { %v192_v20 = vmax.f32 %v190_v18, 0.0  ;;  %v196_v21 = vsel %vm195_vm1, %v191_v17, 0.0 }
 0x120   :  { %198 = vadd.xlane.f32.xlu0 %v196_v21 }
 0x121   :  { %v197_v22 = vsel %vm195_vm1, %v192_v20, 0.0 }
 0x124   :  { %200 = vadd.xlane.f32.xlu0 %v197_v22 }
 0x1ad   :  { %v199_v23 = vpop.xlane.xlu0 %198 }
 0x1ae   :  { %v202_v24 = vmul.f32 0.010416667, %v199_v23 }
 0x1b0   :  { %v204_v25 = vsub.f32 %v196_v21, %v202_v24 }
 0x1b1   :  { %v201_v26 = vpop.xlane.xlu0 %200 }
 0x1b2   :  { %v203_v27 = vmul.f32 0.010416667, %v201_v26  ;;  %v206_v28 = vsel %vm195_vm1, %v204_v25, 0.0 }
 0x1b3   :  { %v208_v29 = vmul.f32 %v206_v28, %v206_v28 }
 0x1b4   :  { %v205_v30 = vsub.f32 %v197_v22, %v203_v27 }
 0x1b5   :  { %210 = vadd.xlane.f32.xlu1 %v208_v29 }
 0x1b6   :  { %v207_v31 = vsel %vm195_vm1, %v205_v30, 0.0 }
 0x1b7   :  { %v209_v32 = vmul.f32 %v207_v31, %v207_v31 }
 0x1b9   :  { %212 = vadd.xlane.f32.xlu1 %v209_v32 }
 0x242   :  { %v211_v33 = vpop.xlane.xlu1 %210 }
 0x243   :  { %v214_v34 = vmul.f32 0.010416667, %v211_v33 }
 0x245   :  { %v216_v35 = vadd.f32 1e-05, %v214_v34 }
 0x246   :  { %v213_v36 = vpop.xlane.xlu1 %212 }
 0x247   :  { %317 = vrsqrt.f32 %v216_v35  ;;  %v215_v37 = vmul.f32 0.010416667, %v213_v36 }
 0x249   :  { %v217_v38 = vadd.f32 1e-05, %v215_v37 }
 0x24b   :  { %319 = vrsqrt.f32 %v217_v38 }
 0x251   :  { %v318_v39 = vpop.eup %317 }
 0x252   :  { %v220_v41 = vmul.f32 %v318_v39, %v206_v28 }
 0x254   :  { %v228_v43 = vmul.f32 %v268_v40, %v220_v41 }
 0x255   :  { %v320_v44 = vpop.eup %319 }
 0x256   :  { %v221_v45 = vmul.f32 %v320_v44, %v207_v31  ;;  %v236_v46 = vadd.f32 %v269_v42, %v228_v43 }
 0x258   :  { %v229_v47 = vmul.f32 %v268_v40, %v221_v45  ;;  %238 = vst [vmem:[#allocation8] sm:$0xff] %v236_v46 }
 0x25a   :  { %v237_v48 = vadd.f32 %v269_v42, %v229_v47 }
 0x25c   :  { %239 = vst [vmem:[#allocation8 + $0x8] sm:$0xff] %v237_v48 }
 0x25d   :  { %376 = shalt.err (!%p373_p6)
}
 0x25e   :  { %s377_s25 = scalar_lea.hbm %s486_s5, 256 }
 0x25f   :  { %p378_p7 = scmp.ne.s32.totalorder %s486_s5, %s377_s25  ;;  %p381_p8 = scmp.lt.u32.totalorder %s377_s25, %s486_s5 }
 0x261   :  { %p383_p9 = pnand %p381_p8, %p378_p7 }
 0x263   :  { %386 = shalt.err (!%p383_p9)
}
 0x264   :  { %s400_s30 = smov 128   ;;  %s401_s6 = smov 8  }
 0x265   :  { %251 = dma.vmem_to_hbm [thread:$0]  %s246_s23, 256, %s486_s5, [#allocation5], %s400_s30, %s400_s30, %s401_s6  }
 0x266   :  { %391 = dma.done.wait [#allocation5], 256  }
 0x267   :  { %392 = vsyncadd [#allocation5], 4294967040 }
 0x268   :  { %255 = vsyncpa [#allocation4], 1 }
 0x269   :  { %256 = vsyncpa [#allocation7], 1 }
 0x26a   :  { %257 = vsyncpa [#allocation5], 1 }

</bundles_post_ra>
